<compile_context>
chip_gen: v5e
topology: v5e:2x2
jax: 0.10.0
libtpu: 0.0.40
codegen_flags: <defaults>
</compile_context>

<pallas_src>
import math

import jax
import jax.numpy as jnp
from jax.experimental import pallas as pl
from jax.experimental.pallas import tpu as pltpu


# ----------------------------------------------------------------------------
# Fused multi-head-attention kernel (one grid step == one batch element)
# ----------------------------------------------------------------------------
def _make_mha_kernel(heads, head_dim, scale):
    def kernel(q_ref, k_ref, v_ref,
               wq_ref, wk_ref, wv_ref, wo_ref,
               bq_ref, bk_ref, bv_ref, bo_ref,
               o_ref):
        f32 = jnp.float32

        # Per-head Linear(head_dim, head_dim) on all heads at once via the
        # precomputed block-diagonal (d_model, d_model) weights.
        qp = jnp.dot(q_ref[...], wq_ref[...], preferred_element_type=f32) + bq_ref[...]
        kp = jnp.dot(k_ref[...], wk_ref[...], preferred_element_type=f32) + bk_ref[...]
        vp = jnp.dot(v_ref[...], wv_ref[...], preferred_element_type=f32) + bv_ref[...]

        sq, d_model = qp.shape
        # Start the fc_out accumulator from the fc_out bias; each head adds its
        # contribution ctx_h @ Wo^T[head rows], which equals concat(ctx) @ Wo^T.
        acc = jnp.broadcast_to(bo_ref[...], (sq, d_model)).astype(f32)

        for h in range(heads):                       # static unroll (tiny)
            lo = h * head_dim
            hi = lo + head_dim
            qh = qp[:, lo:hi]                        # (Sq, hd)
            kh = kp[:, lo:hi]                        # (Sk, hd)
            vh = vp[:, lo:hi]                        # (Sk, hd)

            # energy_h = qh @ kh^T, scaled by 1/sqrt(d_model) (as in the module)
            s = jax.lax.dot_general(
                qh, kh, (((1,), (1,)), ((), ())),
                preferred_element_type=f32) * scale  # (Sq, Sk)

            # numerically stable softmax over keys
            s = s - jnp.max(s, axis=-1, keepdims=True)
            e = jnp.exp(s)
            a = e / jnp.sum(e, axis=-1, keepdims=True)

            ctx_h = jnp.dot(a, vh, preferred_element_type=f32)          # (Sq, hd)
            acc = acc + jnp.dot(ctx_h, wo_ref[lo:hi, :],
                                preferred_element_type=f32)             # fc_out slice

        o_ref[...] = acc

    return kernel


# ----------------------------------------------------------------------------
# Parameter init: raw PyTorch-layout weights + precomputed fused forms
# ----------------------------------------------------------------------------
def init_mha_params(key, heads, d_model):
    head_dim = d_model // heads
    assert head_dim * heads == d_model
    ks = jax.random.split(key, 8)

    def linear(kw, kb, out_f, in_f):
        bound = 1.0 / math.sqrt(in_f)                 # torch nn.Linear default
        w = jax.random.uniform(kw, (out_f, in_f), jnp.float32, -bound, bound)
        b = jax.random.uniform(kb, (out_f,), jnp.float32, -bound, bound)
        return w, b

    wq, bq = linear(ks[0], ks[1], head_dim, head_dim)
    wk, bk = linear(ks[2], ks[3], head_dim, head_dim)
    wv, bv = linear(ks[4], ks[5], head_dim, head_dim)
    wo, bo = linear(ks[6], ks[7], d_model, d_model)

    raw = dict(wq=wq, bq=bq, wk=wk, bk=bk, wv=wv, bv=bv, wo=wo, bo=bo)

    eye = jnp.eye(heads, dtype=jnp.float32)
    fused = dict(
        # block-diagonal so a single (S, D) @ (D, D) matmul applies the
        # per-head Linear(head_dim, head_dim) to every head at once
        wq_block=jnp.kron(eye, wq.T),
        wk_block=jnp.kron(eye, wk.T),
        wv_block=jnp.kron(eye, wv.T),
        wo_t=wo.T,                                    # fc_out, pre-transposed
        bq_flat=jnp.tile(bq, heads).reshape(1, d_model),
        bk_flat=jnp.tile(bk, heads).reshape(1, d_model),
        bv_flat=jnp.tile(bv, heads).reshape(1, d_model),
        bo_flat=bo.reshape(1, d_model),
    )
    return raw, fused


# ----------------------------------------------------------------------------
# Forward pass: one fused pallas_call, grid over batch (parallel)
# ----------------------------------------------------------------------------
def mha_forward(fused, values, keys, query, *, heads, d_model, mask=None):
    assert mask is None, "mask path not implemented (see TODO at top of file)"
    B, Sv, D = values.shape
    Sk = keys.shape[1]
    Sq = query.shape[1]
    assert D == d_model and keys.shape[2] == D and query.shape[2] == D
    head_dim = d_model // heads
    scale = 1.0 / math.sqrt(float(d_model))

    kernel = _make_mha_kernel(heads, head_dim, scale)

    def batched(seq_len):
        # squeeze the batch dim -> kernel sees a (seq, d_model) 2-D ref
        return pl.BlockSpec((None, seq_len, D), lambda b: (b, 0, 0))

    def full(rows, cols):
        return pl.BlockSpec((rows, cols), lambda b: (0, 0))

    return pl.pallas_call(
        kernel,
        out_shape=jax.ShapeDtypeStruct((B, Sq, D), jnp.float32),
        grid=(B,),
        in_specs=[
            batched(Sq),          # query
            batched(Sk),          # keys
            batched(Sv),          # values
            full(D, D),           # wq_block
            full(D, D),           # wk_block
            full(D, D),           # wv_block
            full(D, D),           # wo_t
            full(1, D),           # bq_flat
            full(1, D),           # bk_flat
            full(1, D),           # bv_flat
            full(1, D),           # bo_flat
        ],
        out_specs=batched(Sq),
        compiler_params=pltpu.CompilerParams(
            dimension_semantics=("parallel",)),
    )(query, keys, values,
      fused["wq_block"], fused["wk_block"], fused["wv_block"], fused["wo_t"],
      fused["bq_flat"], fused["bk_flat"], fused["bv_flat"], fused["bo_flat"])


# ----------------------------------------------------------------------------
# Pure-JAX reference mirroring the PyTorch forward (for a sanity check)
# ----------------------------------------------------------------------------
def mha_reference(raw, values, keys, query, *, heads, d_model):
    hp = jax.lax.Precision.HIGHEST
    hd = d_model // heads
    B, Sv, _ = values.shape
    Sk, Sq = keys.shape[1], query.shape[1]
    v4 = values.reshape(B, Sv, heads, hd)
    k4 = keys.reshape(B, Sk, heads, hd)
    q4 = query.reshape(B, Sq, heads, hd)
    v4 = jnp.matmul(v4, raw["wv"].T, precision=hp) + raw["bv"]
    k4 = jnp.matmul(k4, raw["wk"].T, precision=hp) + raw["bk"]
    q4 = jnp.matmul(q4, raw["wq"].T, precision=hp) + raw["bq"]
    energy = jnp.einsum("nqhd,nkhd->nhqk", q4, k4, precision=hp)
    attn = jax.nn.softmax(energy / math.sqrt(float(d_model)), axis=3)
    out = jnp.einsum("nhql,nlhd->nqhd", attn, v4, precision=hp)
    out = out.reshape(B, Sq, heads * hd)
    return jnp.matmul(out, raw["wo"].T, precision=hp) + raw["bo"]


if __name__ == "__main__":
    heads, d_model = 4, 32
    batch, seq = 2, 8

    key = jax.random.PRNGKey(0)
    k_params, k_v, k_k, k_q = jax.random.split(key, 4)
    raw, fused = init_mha_params(k_params, heads, d_model)

    values = jax.random.normal(k_v, (batch, seq, d_model), jnp.float32)
    keys_ = jax.random.normal(k_k, (batch, seq, d_model), jnp.float32)
    query = jax.random.normal(k_q, (batch, seq, d_model), jnp.float32)

    out = mha_forward(fused, values, keys_, query, heads=heads, d_model=d_model)
    out = jax.block_until_ready(out)

    assert out.shape == (batch, seq, d_model)
    assert bool(jnp.all(jnp.isfinite(out)))

    ref = mha_reference(raw, values, keys_, query, heads=heads, d_model=d_model)
    max_err = float(jnp.max(jnp.abs(out - ref)))
    assert max_err < 5e-2, f"kernel vs reference max abs err = {max_err}"

    print("KERNEL_OK")
</pallas_src>

<mosaic_0001>
module attributes {stable_mosaic.version = 11 : i64} {
  func.func @kernel(%arg0: i32, %arg1: memref<1x8x32xf32, #tpu.memory_space<vmem>>, %arg2: memref<1x8x32xf32, #tpu.memory_space<vmem>>, %arg3: memref<1x8x32xf32, #tpu.memory_space<vmem>>, %arg4: memref<32x32xf32, #tpu.memory_space<vmem>>, %arg5: memref<32x32xf32, #tpu.memory_space<vmem>>, %arg6: memref<32x32xf32, #tpu.memory_space<vmem>>, %arg7: memref<32x32xf32, #tpu.memory_space<vmem>>, %arg8: memref<1x32xf32, #tpu.memory_space<vmem>>, %arg9: memref<1x32xf32, #tpu.memory_space<vmem>>, %arg10: memref<1x32xf32, #tpu.memory_space<vmem>>, %arg11: memref<1x32xf32, #tpu.memory_space<vmem>>, %arg12: memref<1x8x32xf32, #tpu.memory_space<vmem>>) attributes {dimension_semantics = [#tpu.dimension_semantics<parallel>], iteration_bounds = array<i64: 2>, scalar_prefetch = 0 : i64, scratch_operands = 0 : i64, tpu.core_type = #tpu.core_type<tc>, window_params = [{transform_indices = @transform_0, window_bounds = array<i64: 1, 8, 32>}, {transform_indices = @transform_1, window_bounds = array<i64: 1, 8, 32>}, {transform_indices = @transform_2, window_bounds = array<i64: 1, 8, 32>}, {pipeline_mode = #tpu.pipeline_mode<synchronous>, transform_indices = @transform_3, window_bounds = array<i64: 32, 32>}, {pipeline_mode = #tpu.pipeline_mode<synchronous>, transform_indices = @transform_4, window_bounds = array<i64: 32, 32>}, {pipeline_mode = #tpu.pipeline_mode<synchronous>, transform_indices = @transform_5, window_bounds = array<i64: 32, 32>}, {pipeline_mode = #tpu.pipeline_mode<synchronous>, transform_indices = @transform_6, window_bounds = array<i64: 32, 32>}, {pipeline_mode = #tpu.pipeline_mode<synchronous>, transform_indices = @transform_7, window_bounds = array<i64: 1, 32>}, {pipeline_mode = #tpu.pipeline_mode<synchronous>, transform_indices = @transform_8, window_bounds = array<i64: 1, 32>}, {pipeline_mode = #tpu.pipeline_mode<synchronous>, transform_indices = @transform_9, window_bounds = array<i64: 1, 32>}, {pipeline_mode = #tpu.pipeline_mode<synchronous>, transform_indices = @transform_10, window_bounds = array<i64: 1, 32>}, {transform_indices = @transform_11, window_bounds = array<i64: 1, 8, 32>}]} {
    %c0 = arith.constant 0 : index
    %c0_0 = arith.constant 0 : index
    %c0_1 = arith.constant 0 : index
    %0 = vector.load %arg1[%c0, %c0_0, %c0_1] : memref<1x8x32xf32, #tpu.memory_space<vmem>>, vector<1x8x32xf32>
    %1 = vector.shape_cast %0 : vector<1x8x32xf32> to vector<8x32xf32>
    %c0_2 = arith.constant 0 : index
    %c0_3 = arith.constant 0 : index
    %2 = vector.load %arg4[%c0_2, %c0_3] : memref<32x32xf32, #tpu.memory_space<vmem>>, vector<32x32xf32>
    %cst = arith.constant dense<0.000000e+00> : vector<8x32xf32>
    %3 = tpu.matmul %1, %2, %cst {dimension_numbers = #tpu.dot_dimension_numbers<[1], [0], [0], [1], [0, 0, 1, 1], [], []>} : vector<8x32xf32>, vector<32x32xf32>, vector<8x32xf32> -> vector<8x32xf32>
    %c0_4 = arith.constant 0 : index
    %c0_5 = arith.constant 0 : index
    %4 = vector.load %arg8[%c0_4, %c0_5] : memref<1x32xf32, #tpu.memory_space<vmem>>, vector<1x32xf32>
    %5 = vector.broadcast %4 : vector<1x32xf32> to vector<8x32xf32>
    %6 = arith.addf %3, %5 : vector<8x32xf32>
    %c0_6 = arith.constant 0 : index
    %c0_7 = arith.constant 0 : index
    %c0_8 = arith.constant 0 : index
    %7 = vector.load %arg2[%c0_6, %c0_7, %c0_8] : memref<1x8x32xf32, #tpu.memory_space<vmem>>, vector<1x8x32xf32>
    %8 = vector.shape_cast %7 : vector<1x8x32xf32> to vector<8x32xf32>
    %c0_9 = arith.constant 0 : index
    %c0_10 = arith.constant 0 : index
    %9 = vector.load %arg5[%c0_9, %c0_10] : memref<32x32xf32, #tpu.memory_space<vmem>>, vector<32x32xf32>
    %cst_11 = arith.constant dense<0.000000e+00> : vector<8x32xf32>
    %10 = tpu.matmul %8, %9, %cst_11 {dimension_numbers = #tpu.dot_dimension_numbers<[1], [0], [0], [1], [0, 0, 1, 1], [], []>} : vector<8x32xf32>, vector<32x32xf32>, vector<8x32xf32> -> vector<8x32xf32>
    %c0_12 = arith.constant 0 : index
    %c0_13 = arith.constant 0 : index
    %11 = vector.load %arg9[%c0_12, %c0_13] : memref<1x32xf32, #tpu.memory_space<vmem>>, vector<1x32xf32>
    %12 = vector.broadcast %11 : vector<1x32xf32> to vector<8x32xf32>
    %13 = arith.addf %10, %12 : vector<8x32xf32>
    %c0_14 = arith.constant 0 : index
    %c0_15 = arith.constant 0 : index
    %c0_16 = arith.constant 0 : index
    %14 = vector.load %arg3[%c0_14, %c0_15, %c0_16] : memref<1x8x32xf32, #tpu.memory_space<vmem>>, vector<1x8x32xf32>
    %15 = vector.shape_cast %14 : vector<1x8x32xf32> to vector<8x32xf32>
    %c0_17 = arith.constant 0 : index
    %c0_18 = arith.constant 0 : index
    %16 = vector.load %arg6[%c0_17, %c0_18] : memref<32x32xf32, #tpu.memory_space<vmem>>, vector<32x32xf32>
    %cst_19 = arith.constant dense<0.000000e+00> : vector<8x32xf32>
    %17 = tpu.matmul %15, %16, %cst_19 {dimension_numbers = #tpu.dot_dimension_numbers<[1], [0], [0], [1], [0, 0, 1, 1], [], []>} : vector<8x32xf32>, vector<32x32xf32>, vector<8x32xf32> -> vector<8x32xf32>
    %c0_20 = arith.constant 0 : index
    %c0_21 = arith.constant 0 : index
    %18 = vector.load %arg10[%c0_20, %c0_21] : memref<1x32xf32, #tpu.memory_space<vmem>>, vector<1x32xf32>
    %19 = vector.broadcast %18 : vector<1x32xf32> to vector<8x32xf32>
    %20 = arith.addf %17, %19 : vector<8x32xf32>
    %c0_22 = arith.constant 0 : index
    %c0_23 = arith.constant 0 : index
    %21 = vector.load %arg11[%c0_22, %c0_23] : memref<1x32xf32, #tpu.memory_space<vmem>>, vector<1x32xf32>
    %22 = vector.shape_cast %21 : vector<1x32xf32> to vector<1x32xf32>
    %23 = vector.broadcast %22 : vector<1x32xf32> to vector<8x32xf32>
    %24 = vector.extract_strided_slice %6 {offsets = [0, 0], sizes = [8, 8], strides = [1, 1]} : vector<8x32xf32> to vector<8x8xf32>
    %25 = vector.extract_strided_slice %13 {offsets = [0, 0], sizes = [8, 8], strides = [1, 1]} : vector<8x32xf32> to vector<8x8xf32>
    %26 = vector.extract_strided_slice %20 {offsets = [0, 0], sizes = [8, 8], strides = [1, 1]} : vector<8x32xf32> to vector<8x8xf32>
    %cst_24 = arith.constant dense<0.000000e+00> : vector<8x8xf32>
    %27 = tpu.matmul %24, %25, %cst_24 {dimension_numbers = #tpu.dot_dimension_numbers<[1], [1], [0], [0], [0, 0, 1, 0], [], []>} : vector<8x8xf32>, vector<8x8xf32>, vector<8x8xf32> -> vector<8x8xf32>
    %cst_25 = arith.constant 0.176776692 : f32
    %28 = vector.broadcast %cst_25 : f32 to vector<8x8xf32>
    %29 = arith.mulf %27, %28 : vector<8x8xf32>
    %cst_26 = arith.constant dense<0xFF800000> : vector<8xf32>
    %30 = vector.multi_reduction <maximumf>, %29, %cst_26 [1] : vector<8x8xf32> to vector<8xf32>
    %31 = vector.shape_cast %30 : vector<8xf32> to vector<8x1xf32>
    %32 = vector.broadcast %31 : vector<8x1xf32> to vector<8x8xf32>
    %33 = arith.subf %29, %32 : vector<8x8xf32>
    %34 = math.exp %33 : vector<8x8xf32>
    %cst_27 = arith.constant dense<0.000000e+00> : vector<8xf32>
    %35 = vector.multi_reduction <add>, %34, %cst_27 [1] : vector<8x8xf32> to vector<8xf32>
    %36 = vector.shape_cast %35 : vector<8xf32> to vector<8x1xf32>
    %37 = vector.broadcast %36 : vector<8x1xf32> to vector<8x8xf32>
    %38 = arith.divf %34, %37 : vector<8x8xf32>
    %cst_28 = arith.constant dense<0.000000e+00> : vector<8x8xf32>
    %39 = tpu.matmul %38, %26, %cst_28 {dimension_numbers = #tpu.dot_dimension_numbers<[1], [0], [0], [1], [0, 0, 1, 1], [], []>} : vector<8x8xf32>, vector<8x8xf32>, vector<8x8xf32> -> vector<8x8xf32>
    %c0_29 = arith.constant 0 : index
    %c0_30 = arith.constant 0 : index
    %40 = vector.load %arg7[%c0_29, %c0_30] : memref<32x32xf32, #tpu.memory_space<vmem>>, vector<8x32xf32>
    %cst_31 = arith.constant dense<0.000000e+00> : vector<8x32xf32>
    %41 = tpu.matmul %39, %40, %cst_31 {dimension_numbers = #tpu.dot_dimension_numbers<[1], [0], [0], [1], [0, 0, 1, 1], [], []>} : vector<8x8xf32>, vector<8x32xf32>, vector<8x32xf32> -> vector<8x32xf32>
    %42 = arith.addf %23, %41 : vector<8x32xf32>
    %43 = vector.extract_strided_slice %6 {offsets = [0, 8], sizes = [8, 8], strides = [1, 1]} : vector<8x32xf32> to vector<8x8xf32>
    %44 = vector.extract_strided_slice %13 {offsets = [0, 8], sizes = [8, 8], strides = [1, 1]} : vector<8x32xf32> to vector<8x8xf32>
    %45 = vector.extract_strided_slice %20 {offsets = [0, 8], sizes = [8, 8], strides = [1, 1]} : vector<8x32xf32> to vector<8x8xf32>
    %cst_32 = arith.constant dense<0.000000e+00> : vector<8x8xf32>
    %46 = tpu.matmul %43, %44, %cst_32 {dimension_numbers = #tpu.dot_dimension_numbers<[1], [1], [0], [0], [0, 0, 1, 0], [], []>} : vector<8x8xf32>, vector<8x8xf32>, vector<8x8xf32> -> vector<8x8xf32>
    %cst_33 = arith.constant 0.176776692 : f32
    %47 = vector.broadcast %cst_33 : f32 to vector<8x8xf32>
    %48 = arith.mulf %46, %47 : vector<8x8xf32>
    %cst_34 = arith.constant dense<0xFF800000> : vector<8xf32>
    %49 = vector.multi_reduction <maximumf>, %48, %cst_34 [1] : vector<8x8xf32> to vector<8xf32>
    %50 = vector.shape_cast %49 : vector<8xf32> to vector<8x1xf32>
    %51 = vector.broadcast %50 : vector<8x1xf32> to vector<8x8xf32>
    %52 = arith.subf %48, %51 : vector<8x8xf32>
    %53 = math.exp %52 : vector<8x8xf32>
    %cst_35 = arith.constant dense<0.000000e+00> : vector<8xf32>
    %54 = vector.multi_reduction <add>, %53, %cst_35 [1] : vector<8x8xf32> to vector<8xf32>
    %55 = vector.shape_cast %54 : vector<8xf32> to vector<8x1xf32>
    %56 = vector.broadcast %55 : vector<8x1xf32> to vector<8x8xf32>
    %57 = arith.divf %53, %56 : vector<8x8xf32>
    %cst_36 = arith.constant dense<0.000000e+00> : vector<8x8xf32>
    %58 = tpu.matmul %57, %45, %cst_36 {dimension_numbers = #tpu.dot_dimension_numbers<[1], [0], [0], [1], [0, 0, 1, 1], [], []>} : vector<8x8xf32>, vector<8x8xf32>, vector<8x8xf32> -> vector<8x8xf32>
    %c8 = arith.constant 8 : index
    %c0_37 = arith.constant 0 : index
    %59 = vector.load %arg7[%c8, %c0_37] : memref<32x32xf32, #tpu.memory_space<vmem>>, vector<8x32xf32>
    %cst_38 = arith.constant dense<0.000000e+00> : vector<8x32xf32>
    %60 = tpu.matmul %58, %59, %cst_38 {dimension_numbers = #tpu.dot_dimension_numbers<[1], [0], [0], [1], [0, 0, 1, 1], [], []>} : vector<8x8xf32>, vector<8x32xf32>, vector<8x32xf32> -> vector<8x32xf32>
    %61 = arith.addf %42, %60 : vector<8x32xf32>
    %62 = vector.extract_strided_slice %6 {offsets = [0, 16], sizes = [8, 8], strides = [1, 1]} : vector<8x32xf32> to vector<8x8xf32>
    %63 = vector.extract_strided_slice %13 {offsets = [0, 16], sizes = [8, 8], strides = [1, 1]} : vector<8x32xf32> to vector<8x8xf32>
    %64 = vector.extract_strided_slice %20 {offsets = [0, 16], sizes = [8, 8], strides = [1, 1]} : vector<8x32xf32> to vector<8x8xf32>
    %cst_39 = arith.constant dense<0.000000e+00> : vector<8x8xf32>
    %65 = tpu.matmul %62, %63, %cst_39 {dimension_numbers = #tpu.dot_dimension_numbers<[1], [1], [0], [0], [0, 0, 1, 0], [], []>} : vector<8x8xf32>, vector<8x8xf32>, vector<8x8xf32> -> vector<8x8xf32>
    %cst_40 = arith.constant 0.176776692 : f32
    %66 = vector.broadcast %cst_40 : f32 to vector<8x8xf32>
    %67 = arith.mulf %65, %66 : vector<8x8xf32>
    %cst_41 = arith.constant dense<0xFF800000> : vector<8xf32>
    %68 = vector.multi_reduction <maximumf>, %67, %cst_41 [1] : vector<8x8xf32> to vector<8xf32>
    %69 = vector.shape_cast %68 : vector<8xf32> to vector<8x1xf32>
    %70 = vector.broadcast %69 : vector<8x1xf32> to vector<8x8xf32>
    %71 = arith.subf %67, %70 : vector<8x8xf32>
    %72 = math.exp %71 : vector<8x8xf32>
    %cst_42 = arith.constant dense<0.000000e+00> : vector<8xf32>
    %73 = vector.multi_reduction <add>, %72, %cst_42 [1] : vector<8x8xf32> to vector<8xf32>
    %74 = vector.shape_cast %73 : vector<8xf32> to vector<8x1xf32>
    %75 = vector.broadcast %74 : vector<8x1xf32> to vector<8x8xf32>
    %76 = arith.divf %72, %75 : vector<8x8xf32>
    %cst_43 = arith.constant dense<0.000000e+00> : vector<8x8xf32>
    %77 = tpu.matmul %76, %64, %cst_43 {dimension_numbers = #tpu.dot_dimension_numbers<[1], [0], [0], [1], [0, 0, 1, 1], [], []>} : vector<8x8xf32>, vector<8x8xf32>, vector<8x8xf32> -> vector<8x8xf32>
    %c16 = arith.constant 16 : index
    %c0_44 = arith.constant 0 : index
    %78 = vector.load %arg7[%c16, %c0_44] : memref<32x32xf32, #tpu.memory_space<vmem>>, vector<8x32xf32>
    %cst_45 = arith.constant dense<0.000000e+00> : vector<8x32xf32>
    %79 = tpu.matmul %77, %78, %cst_45 {dimension_numbers = #tpu.dot_dimension_numbers<[1], [0], [0], [1], [0, 0, 1, 1], [], []>} : vector<8x8xf32>, vector<8x32xf32>, vector<8x32xf32> -> vector<8x32xf32>
    %80 = arith.addf %61, %79 : vector<8x32xf32>
    %81 = vector.extract_strided_slice %6 {offsets = [0, 24], sizes = [8, 8], strides = [1, 1]} : vector<8x32xf32> to vector<8x8xf32>
    %82 = vector.extract_strided_slice %13 {offsets = [0, 24], sizes = [8, 8], strides = [1, 1]} : vector<8x32xf32> to vector<8x8xf32>
    %83 = vector.extract_strided_slice %20 {offsets = [0, 24], sizes = [8, 8], strides = [1, 1]} : vector<8x32xf32> to vector<8x8xf32>
    %cst_46 = arith.constant dense<0.000000e+00> : vector<8x8xf32>
    %84 = tpu.matmul %81, %82, %cst_46 {dimension_numbers = #tpu.dot_dimension_numbers<[1], [1], [0], [0], [0, 0, 1, 0], [], []>} : vector<8x8xf32>, vector<8x8xf32>, vector<8x8xf32> -> vector<8x8xf32>
    %cst_47 = arith.constant 0.176776692 : f32
    %85 = vector.broadcast %cst_47 : f32 to vector<8x8xf32>
    %86 = arith.mulf %84, %85 : vector<8x8xf32>
    %cst_48 = arith.constant dense<0xFF800000> : vector<8xf32>
    %87 = vector.multi_reduction <maximumf>, %86, %cst_48 [1] : vector<8x8xf32> to vector<8xf32>
    %88 = vector.shape_cast %87 : vector<8xf32> to vector<8x1xf32>
    %89 = vector.broadcast %88 : vector<8x1xf32> to vector<8x8xf32>
    %90 = arith.subf %86, %89 : vector<8x8xf32>
    %91 = math.exp %90 : vector<8x8xf32>
    %cst_49 = arith.constant dense<0.000000e+00> : vector<8xf32>
    %92 = vector.multi_reduction <add>, %91, %cst_49 [1] : vector<8x8xf32> to vector<8xf32>
    %93 = vector.shape_cast %92 : vector<8xf32> to vector<8x1xf32>
    %94 = vector.broadcast %93 : vector<8x1xf32> to vector<8x8xf32>
    %95 = arith.divf %91, %94 : vector<8x8xf32>
    %cst_50 = arith.constant dense<0.000000e+00> : vector<8x8xf32>
    %96 = tpu.matmul %95, %83, %cst_50 {dimension_numbers = #tpu.dot_dimension_numbers<[1], [0], [0], [1], [0, 0, 1, 1], [], []>} : vector<8x8xf32>, vector<8x8xf32>, vector<8x8xf32> -> vector<8x8xf32>
    %c24 = arith.constant 24 : index
    %c0_51 = arith.constant 0 : index
    %97 = vector.load %arg7[%c24, %c0_51] : memref<32x32xf32, #tpu.memory_space<vmem>>, vector<8x32xf32>
    %cst_52 = arith.constant dense<0.000000e+00> : vector<8x32xf32>
    %98 = tpu.matmul %96, %97, %cst_52 {dimension_numbers = #tpu.dot_dimension_numbers<[1], [0], [0], [1], [0, 0, 1, 1], [], []>} : vector<8x8xf32>, vector<8x32xf32>, vector<8x32xf32> -> vector<8x32xf32>
    %99 = arith.addf %80, %98 : vector<8x32xf32>
    %c0_53 = arith.constant 0 : index
    %c0_54 = arith.constant 0 : index
    %c0_55 = arith.constant 0 : index
    %100 = vector.load %arg12[%c0_53, %c0_54, %c0_55] : memref<1x8x32xf32, #tpu.memory_space<vmem>>, vector<1x8x32xf32>
    %101 = vector.shape_cast %100 : vector<1x8x32xf32> to vector<8x32xf32>
    %102 = vector.shape_cast %99 : vector<8x32xf32> to vector<1x8x32xf32>
    tpu.vector_store %arg12[%c0_53, %c0_54, %c0_55], %102 {strides = array<i32>} : memref<1x8x32xf32, #tpu.memory_space<vmem>>, vector<1x8x32xf32>,
    return
  }
  func.func @transform_0(%arg0: i32) -> (i32, i32, i32) {
    %c0_i32 = arith.constant 0 : i32
    %c0_i32_0 = arith.constant 0 : i32
    %c0_i32_1 = arith.constant 0 : i32
    return %arg0, %c0_i32, %c0_i32_0 : i32, i32, i32
  }
  func.func @transform_1(%arg0: i32) -> (i32, i32, i32) {
    %c0_i32 = arith.constant 0 : i32
    %c0_i32_0 = arith.constant 0 : i32
    %c0_i32_1 = arith.constant 0 : i32
    return %arg0, %c0_i32, %c0_i32_0 : i32, i32, i32
  }
  func.func @transform_2(%arg0: i32) -> (i32, i32, i32) {
    %c0_i32 = arith.constant 0 : i32
    %c0_i32_0 = arith.constant 0 : i32
    %c0_i32_1 = arith.constant 0 : i32
    return %arg0, %c0_i32, %c0_i32_0 : i32, i32, i32
  }
  func.func @transform_3(%arg0: i32) -> (i32, i32) {
    %c0_i32 = arith.constant 0 : i32
    %c0_i32_0 = arith.constant 0 : i32
    %c0_i32_1 = arith.constant 0 : i32
    return %c0_i32, %c0_i32_0 : i32, i32
  }
  func.func @transform_4(%arg0: i32) -> (i32, i32) {
    %c0_i32 = arith.constant 0 : i32
    %c0_i32_0 = arith.constant 0 : i32
    %c0_i32_1 = arith.constant 0 : i32
    return %c0_i32, %c0_i32_0 : i32, i32
  }
  func.func @transform_5(%arg0: i32) -> (i32, i32) {
    %c0_i32 = arith.constant 0 : i32
    %c0_i32_0 = arith.constant 0 : i32
    %c0_i32_1 = arith.constant 0 : i32
    return %c0_i32, %c0_i32_0 : i32, i32
  }
  func.func @transform_6(%arg0: i32) -> (i32, i32) {
    %c0_i32 = arith.constant 0 : i32
    %c0_i32_0 = arith.constant 0 : i32
    %c0_i32_1 = arith.constant 0 : i32
    return %c0_i32, %c0_i32_0 : i32, i32
  }
  func.func @transform_7(%arg0: i32) -> (i32, i32) {
    %c0_i32 = arith.constant 0 : i32
    %c0_i32_0 = arith.constant 0 : i32
    %c0_i32_1 = arith.constant 0 : i32
    return %c0_i32, %c0_i32_0 : i32, i32
  }
  func.func @transform_8(%arg0: i32) -> (i32, i32) {
    %c0_i32 = arith.constant 0 : i32
    %c0_i32_0 = arith.constant 0 : i32
    %c0_i32_1 = arith.constant 0 : i32
    return %c0_i32, %c0_i32_0 : i32, i32
  }
  func.func @transform_9(%arg0: i32) -> (i32, i32) {
    %c0_i32 = arith.constant 0 : i32
    %c0_i32_0 = arith.constant 0 : i32
    %c0_i32_1 = arith.constant 0 : i32
    return %c0_i32, %c0_i32_0 : i32, i32
  }
  func.func @transform_10(%arg0: i32) -> (i32, i32) {
    %c0_i32 = arith.constant 0 : i32
    %c0_i32_0 = arith.constant 0 : i32
    %c0_i32_1 = arith.constant 0 : i32
    return %c0_i32, %c0_i32_0 : i32, i32
  }
  func.func @transform_11(%arg0: i32) -> (i32, i32, i32) {
    %c0_i32 = arith.constant 0 : i32
    %c0_i32_0 = arith.constant 0 : i32
    %c0_i32_1 = arith.constant 0 : i32
    return %arg0, %c0_i32, %c0_i32_0 : i32, i32, i32
  }
}

</mosaic_0001>

<bundles_post_ra>
// kernel: tpu_custom_call.1
= control target key start
LH: loop header
LB: loop body
LE: loop exit
PB: predicated region body
PF: predicated region fallthrough
CT: control target
= control target key end

     0   :  { %s2052_s0 = inlined_call_operand.hbm [shape: f32[2,8,32], index: 0, kind: input, shape index: {}]   ;;  %s2053_s1 = inlined_call_operand.hbm [shape: f32[2,8,32], index: 1, kind: input, shape index: {}]   ;;  %s2054_s2 = inlined_call_operand.hbm [shape: f32[2,8,32], index: 2, kind: input, shape index: {}]   ;;  %s2055_s3 = inlined_call_operand.hbm [shape: f32[32,32], index: 3, kind: input, shape index: {}]   ;;  %s2056_s4 = inlined_call_operand.hbm [shape: f32[32,32], index: 4, kind: input, shape index: {}]   ;;  %s2057_s5 = inlined_call_operand.hbm [shape: f32[32,32], index: 5, kind: input, shape index: {}]   ;;  %s2058_s6 = inlined_call_operand.hbm [shape: f32[32,32], index: 6, kind: input, shape index: {}]   ;;  %s2059_s7 = inlined_call_operand.vmem [shape: f32[1,32], index: 7, kind: input, shape index: {}]   ;;  %s2060_s8 = inlined_call_operand.vmem [shape: f32[1,32], index: 8, kind: input, shape index: {}]   ;;  %s2061_s9 = inlined_call_operand.vmem [shape: f32[1,32], index: 9, kind: input, shape index: {}]   ;;  %s2062_s10 = inlined_call_operand.vmem [shape: f32[1,32], index: 10, kind: input, shape index: {}]   ;;  %s2063_s11 = inlined_call_operand.hbm [shape: f32[2,8,32], index: 11, kind: output, shape index: {}]  }
   0x1   :  { %2077 = sst [smem:[#allocation26_spill]] %s2053_s1 }
   0x2   :  { %2078 = sst [smem:[#allocation27_spill]] %s2055_s3 }
   0x3   :  { %2079 = sst [smem:[#allocation28_spill]] %s2056_s4 }
   0x4   :  { %2080 = sst [smem:[#allocation29_spill]] %s2057_s5 }
   0x5   :  { %2081 = sst [smem:[#allocation30_spill]] %s2058_s6 }
   0x6   :  { %16 = vsyncpa [#allocation3], 0 }
   0x7   :  { %18 = vsyncpa [#allocation3 + $0x1], 0 }
   0x8   :  { %19 = vsyncpa [#allocation6], 0 }
   0x9   :  { %21 = vsyncpa [#allocation6 + $0x1], 0 }
   0xa   :  { %22 = vsyncpa [#allocation9], 0 }
   0xb   :  { %23 = vsyncpa [#allocation12], 0 }
   0xc   :  { %24 = vsyncpa [#allocation4], 0 }
   0xd   :  { %26 = vsyncpa [#allocation4 + $0x1], 0  ;;  %s1753_s17 = smov 0   ;;  %s1755_s18 = smov 0  }
   0xe   :  { %s1757_s19 = smov 0   ;;  %s1759_s20 = smov 0  }
   0xf LB: > { %2082 = sst [smem:[#allocation20_spill]] %s1670_s17  ;;  %s1777_s24 = sadd.s32 4294967295, %s1682_s20   ;;  %s1682_s20 = sphi %s1759_s20, %s2111_s20   ;;  %s1678_s19 = sphi %s1757_s19, %s2115_s19   ;;  %s1674_s18 = sphi %s1755_s18, %s2114_s18   ;;  %s1670_s17 = sphi %s1753_s17, %s2113_s17  }
  0x10   : > { %2083 = sst [smem:[#allocation21_spill]] %s1682_s20  ;;  %p1228_p0 = scmp.ge.s32.totalorder %s1682_s20, 1 }
  0x11   : > { %s2084_s3 = sld [smem:[#allocation27_spill]]  ;;  %p2074_p1 = scmp.eq.s32.totalorder %s1777_s24, 0 }
  0x12   : > { %p309_p2 = scmp.lt.s32.totalorder %s1682_s20, 3  ;;  %s1684_s26 = smov [#allocation8]  }
  0x13   : > { %s322_s27 = sshll.u32 %s1684_s26, 4  ;;  %s2086_s5 = sld [smem:[#allocation29_spill]]  ;;  %s323_s27 = int_to_ptr.vmem [resolvable:$true] %s322_s27 }
  0x14   : > { %p1782_p3 = pnand %p1228_p0, %p309_p2  ;;  %s1685_s13 = smov [#allocation11]  }
  0x15   : > { %s350_s14 = sshll.u32 %s1685_s13, 4  ;;  %s2064_s15 = smov 128   ;;  %s351_s14 = int_to_ptr.vmem [resolvable:$true] %s350_s14 }
  0x16   : > { %p1296_p4 = pneg %p1782_p3  ;;  %s2066_s16 = smov 8  }
  0x17   : > { %s320_s23 = sshll.u32 %s2084_s3, 4  ;;  %s1227_s21 = sadd.s32 4294967294, %s1682_s20   ;;  %s321_s23 = int_to_ptr.hbm [resolvable:$true] %s320_s23 }
  0x18   : > { %p1794_p6 = pnand %p1296_p4, %p2074_p1  ;;  %s1810_s22 = sadd.s32 1, %s1682_s20  }
  0x19   : > { %s348_s30 = sshll.u32 %s2086_s5, 4  ;;  %2088 = sst [smem:[#allocation22_spill]] %s1810_s22  ;;  %s349_s30 = int_to_ptr.hbm [resolvable:$true] %s348_s30 }
  0x1a   : > { %1299 = dma.hbm_to_vmem [thread:$0]  (!%p1794_p6), %s321_s23, 512, %s323_s27, [#allocation9], %s2064_s15, %s2064_s15, %s2066_s16  }
  0x1b   : > { %1305 = dma.hbm_to_vmem [thread:$0]  (!%p1794_p6), %s349_s30, 512, %s351_s14, [#allocation12], %s2064_s15, %s2064_s15, %s2066_s16  }
  0x1c   : > { %s36_s26 = ssub.s32 %s1682_s20, %s1810_s22  ;;  %s39_s28 = sadd.s32 1, %s1678_s19 }
  0x1d   : > { %p37_p7 = scmp.eq.s32.totalorder %s36_s26, 0  ;;  %p46_p8 = scmp.ne.s32.totalorder %s1678_s19, %s1674_s18 }
  0x1e   : > { %p47_p9 = scmp.eq.s32.totalorder %s1682_s20, 0  ;;  %p52_p10 = scmp.ne.s32.totalorder %s1674_s18, %s1670_s17 }
  0x1f   : > { %s1821_s23 = scalar_select %p37_p7, %s1678_s19, %s39_s28  }
  0x20   : > { %p48_p11 = por %p47_p9, %p46_p8  ;;  %p1825_p12 = por %p2074_p1, %p52_p10 }
  0x21   : > { %2089 = sst [smem:[#allocation23_spill]] %s1821_s23  ;;  %p296_p13 = scmp.eq.s32.totalorder %s1777_s24, 1 }
  0x22   : > { %p302_p0 = scmp.eq.s32.totalorder %s1227_s21, 1  ;;  %p1327_p2 = scmp.lt.s32.totalorder %s1682_s20, 2 }
  0x23   : > { %s2070_s29 = sand.u32 1, %s1678_s19   ;;  %p1832_p4 = por %p296_p13, %p46_p8 }
  0x24   : > { %p1836_p5 = por %p302_p0, %p52_p10  ;;  %s1842_s14 = sshll.u32 %s2070_s29, 3 }
  0x25   : > { %s2091_s30 = scalar_select %p1832_p4, 1, 0 }
  0x26   : > { %s2093_s13 = scalar_select %p1836_p5, 1, 0 }
  0x27   : > { %2092 = sst [smem:[#allocation24_spill]] %s2091_s30  ;;  %s1845_s26 = sshll.u32 %s1682_s20, 3 }
  0x28   : > { %2094 = sst [smem:[#allocation25_spill]] %s2093_s13  ;;  %p1847_p7 = pnand %p1327_p2, %p48_p11 }
  0x29   : > { %s409_s21 = sand.u32 1, %s1682_s20   ;;  %s2096_s1 = sld [smem:[#allocation26_spill]] }
  0x2a   : > { %s413_s23 = scalar_lea.vmem [#allocation5], %s1842_s14  ;;  %s1857_s29 = scalar_lea.sflag [#allocation6], %s409_s21 }
  0x2b   : > { %s421_s22 = sshll.u32 %s413_s23, 4  ;;  %p1458_p9 = pneg %p1847_p7  ;;  %s422_s22 = int_to_ptr.vmem [resolvable:$true] %s421_s22 }
  0x2f   : > { %s417_s3 = scalar_lea.hbm %s2096_s1, %s1845_s26 }
  0x30   : > { %s419_s5 = sshll.u32 %s417_s3, 4  ;;  %s1461_s3 = scalar_lea.hbm %s2096_s1, 16  ;;  %s420_s5 = int_to_ptr.hbm [resolvable:$true] %s419_s5 }
  0x31   : > { %s1454_s13 = sshra.s32 %s420_s5, 4  ;;  %s1455_s13 = int_to_ptr.hbm [resolvable:$true] %s1454_s13 }
  0x32   : > { %s1456_s17 = scalar_lea.hbm %s1455_s13, 8  ;;  %p1462_p13 = scmp.lt.s32.totalorder %s1455_s13, %s2096_s1 }
  0x33   : > { %p1457_p8 = scmp.ne.s32.totalorder %s1455_s13, %s1456_s17  ;;  %p1463_p0 = scmp.lt.s32.totalorder %s1461_s3, %s1456_s17 }
  0x35   : > { %p1459_p10 = pnand %p1458_p9, %p1457_p8  ;;  %p1464_p2 = por %p1463_p0, %p1462_p13 }
  0x37   : > { %p1460_p11 = pneg %p1459_p10 }
  0x39   : > { %p1465_p1 = pnand %p1464_p2, %p1460_p11 }
  0x3b   : > { %1468 = shalt.err (!%p1465_p1)
}
  0x3c   : > { %1315 = dma.hbm_to_vmem [thread:$0]  (!%p1847_p7), %s420_s5, 128, %s422_s22, %s1857_s29  }
  0x3d   : > { %s2097_s4 = sld [smem:[#allocation28_spill]]  ;;  %s1688_s15 = smov [#allocation10]  }
  0x3e   : > { %s336_s13 = sshll.u32 %s1688_s15, 4  ;;  %s2098_s6 = sld [smem:[#allocation30_spill]]  ;;  %s337_s13 = int_to_ptr.vmem [resolvable:$true] %s336_s13 }
  0x3f   : > { %s2099_s23 = smov 8   ;;  %s2100_s1 = smov 128  }
  0x40   : > { %s1689_s5 = smov [#allocation13]   ;;  %s398_s15 = scalar_lea.hbm %s2052_s0, %s1845_s26 }
  0x41   : > { %s364_s22 = sshll.u32 %s1689_s5, 4  ;;  %s394_s17 = scalar_lea.vmem [#allocation2], %s1842_s14  ;;  %s365_s22 = int_to_ptr.vmem [resolvable:$true] %s364_s22 }
  0x42   : > { %s402_s3 = sshll.u32 %s394_s17, 4  ;;  %s403_s3 = int_to_ptr.vmem [resolvable:$true] %s402_s3 }
  0x43   : > { %s334_s20 = sshll.u32 %s2097_s4, 4  ;;  %s400_s4 = sshll.u32 %s398_s15, 4  ;;  %s335_s20 = int_to_ptr.hbm [resolvable:$true] %s334_s20  ;;  %s401_s4 = int_to_ptr.hbm [resolvable:$true] %s400_s4 }
  0x44   : > { %s362_s16 = sshll.u32 %s2098_s6, 4  ;;  %s1544_s6 = sshra.s32 %s401_s4, 4  ;;  %s363_s16 = int_to_ptr.hbm [resolvable:$true] %s362_s16  ;;  %s1545_s6 = int_to_ptr.hbm [resolvable:$true] %s1544_s6 }
  0x45   : > { %1302 = dma.hbm_to_vmem [thread:$0]  (!%p1794_p6), %s335_s20, 512, %s337_s13, [#allocation9], %s2100_s1, %s2100_s1, %s2099_s23  }
  0x46   : > { %1308 = dma.hbm_to_vmem [thread:$0]  (!%p1794_p6), %s363_s16, 512, %s365_s22, [#allocation12], %s2100_s1, %s2100_s1, %s2099_s23  }
  0x47   : > { %s2101_s20 = sand.u32 1, %s1678_s19   ;;  %s1546_s5 = scalar_lea.hbm %s1545_s6, 8 }
  0x48   : > { %s391_s13 = scalar_lea.sflag [#allocation3], %s2101_s20  ;;  %p1547_p1 = scmp.ne.s32.totalorder %s1545_s6, %s1546_s5 }
  0x49   : > { %s1551_s16 = scalar_lea.hbm %s2052_s0, 16  ;;  %p1552_p6 = scmp.lt.s32.totalorder %s1545_s6, %s2052_s0 }
  0x4a   : > { %p1549_p8 = pnand %p1547_p1, %p1458_p9  ;;  %p1553_p11 = scmp.lt.s32.totalorder %s1551_s16, %s1546_s5 }
  0x4c   : > { %p1550_p10 = pneg %p1549_p8  ;;  %p1554_p13 = por %p1553_p11, %p1552_p6 }
  0x4e   : > { %p1555_p0 = pnand %p1554_p13, %p1550_p10 }
  0x50   : > { %1558 = shalt.err (!%p1555_p0)
}
  0x51   : > { %1312 = dma.hbm_to_vmem [thread:$0]  (!%p1847_p7), %s401_s4, 128, %s403_s3, %s391_s13  }
  0x52   : > { %s436_s15 = scalar_lea.hbm %s2054_s2, %s1845_s26  ;;  %s432_s17 = scalar_lea.vmem [#allocation7], %s1842_s14 }
  0x53   : > { %s440_s20 = sshll.u32 %s432_s17, 4  ;;  %s438_s1 = sshll.u32 %s436_s15, 4  ;;  %s441_s20 = int_to_ptr.vmem [resolvable:$true] %s440_s20  ;;  %s439_s1 = int_to_ptr.hbm [resolvable:$true] %s438_s1 }
  0x54   : > { %s1574_s6 = sshra.s32 %s439_s1, 4  ;;  %s1581_s4 = scalar_lea.hbm %s2054_s2, 16  ;;  %s1575_s6 = int_to_ptr.hbm [resolvable:$true] %s1574_s6 }
  0x55   : > { %s1576_s5 = scalar_lea.hbm %s1575_s6, 8  ;;  %p1582_p10 = scmp.lt.s32.totalorder %s1575_s6, %s2054_s2 }
  0x56   : > { %p1577_p2 = scmp.ne.s32.totalorder %s1575_s6, %s1576_s5  ;;  %p1583_p6 = scmp.lt.s32.totalorder %s1581_s4, %s1576_s5 }
  0x58   : > { %p1579_p1 = pnand %p1577_p2, %p1458_p9  ;;  %p1584_p11 = por %p1583_p6, %p1582_p10 }
  0x5a   : > { %p1580_p8 = pneg %p1579_p1 }
  0x5c   : > { %p1585_p13 = pnand %p1584_p11, %p1580_p8 }
  0x5e   : > { %1588 = shalt.err (!%p1585_p13)
}
  0x5f   : > { %1318 = dma.hbm_to_vmem [thread:$0]  (!%p1847_p7), %s439_s1, 128, %s441_s20, %s1857_s29  }
  0x60   : > { %449 = sbr.rel (%p1782_p3) target bundleno = 1557 (0x615), region = 64  ;;  %s1927_s14 = sand.u32 (!%p1782_p3), 1, %s1674_s18  }
  0x61   : > { %s1930_s26 = sshll.u32 (!%p1782_p3), %s1927_s14, 3  ;;  %s452_s23 = scalar_lea.sflag (!%p1782_p3), [#allocation3], %s1927_s14 }
  0x62   : > { %s455_s22 = scalar_lea.vmem (!%p1782_p3), [#allocation2], %s1930_s26 }
  0x65   : > { %1649 = dma.done.wait (%p1825_p12), %s452_s23, 128  }
  0x66   : > { %1651 = vsyncadd (%p1825_p12), %s452_s23, 4294967168  ;;  %s461_s25 = sand.u32 1, %s1777_s24   ;;  %s465_s28 = scalar_lea.vmem [#allocation5], %s1930_s26 }
  0x67   : > { %s462_s29 = scalar_lea.sflag [#allocation6], %s461_s25 }
  0x68   : > { %1653 = dma.done.wait (%p1825_p12), %s462_s29, 256  }
  0x69   : > { %1655 = vsyncadd (%p1825_p12), %s462_s29, 4294967040  ;;  %s475_s30 = scalar_lea.vmem [#allocation7], %s1930_s26  ;;  %p2102_p3 = scmp.eq.s32.totalorder %s1777_s24, 0 }
  0x6b   : > { %1657 = dma.done.wait (%p2102_p3), [#allocation9], 1024   ;;  %p2103_p7 = pmov %p2102_p3 }
  0x6c   : > { %p2104_p9 = pmov %p2102_p3 }
  0x6d   : > { %1659 = vsyncadd (%p2103_p7), [#allocation9], 4294966272 }
  0x6e   : > { %1661 = dma.done.wait (%p2104_p9), [#allocation12], 1024   ;;  %p2105_p0 = pmov %p2102_p3 }
  0x6f   : > { %v582_v0 = vld [vmem:[#allocation10 + $0x18] sm:$0xff]  ;;  %v581_v1 = vld [vmem:[#allocation10 + $0x10] sm:$0xff]  ;;  %v580_v4 = vld [vmem:[#allocation10 + $0x8] sm:$0xff]  ;;  %vm554_vm0 = vcmask 261120   ;;  %vm646_vm1 = vcmask 64512   ;;  %s1690_s20 = smov 120  }
  0x70   : > { %1663 = vsyncadd (%p2105_p0), [#allocation12], 4294966272  ;;  %v549_v2 = vld [vmem:[#allocation8 + $0x18] sm:$0xff]  ;;  %602 = vmatpush.msra.mxu1 %v582_v0  ;;  %v548_v3 = vld [vmem:[#allocation8 + $0x10] sm:$0xff]  ;;  %s1691_s5 = smov 112   ;;  %s1692_s12 = smov 104  }
  0x71   : > { %570 = vmatpush.msra.mxu0 %v549_v2  ;;  %v547_v5 = vld [vmem:[#allocation8 + $0x8] sm:$0xff]  ;;  %v614_v6 = vld [vmem:[#allocation11 + $0x18] sm:$0xff]  ;;  %v613_v7 = vld [vmem:[#allocation11 + $0x10] sm:$0xff]  ;;  %s1269_s3 = sshll.u32 %s1777_s24, 3  ;;  %s544_s29 = scalar_lea.vmem [#allocation14], %s1930_s26 }
  0x72   : > { %603 = vmatpush.msra.mxu1 %v581_v1  ;;  %v579_v8 = vld [vmem:[#allocation10] sm:$0xff]  ;;  %634 = vmatpush.msra.mxu2 %v614_v6  ;;  %v545_v11 = vld [vmem:[%s455_s22] sm:$0xff]  ;;  %v612_v12 = vld [vmem:[#allocation11 + $0x8] sm:$0xff]  ;;  %s1071_s22 = scalar_lea.hbm %s2063_s11, %s1269_s3  ;;  %s1061_s27 = scalar_lea.sflag [#allocation4], %s1927_s14 }
  0x73   : > { %571 = vmatpush.msra.mxu0 %v548_v3  ;;  %v578_v9 = vld [vmem:[%s465_s28] sm:$0xff]  ;;  %v610_v14 = vld [vmem:[%s475_s30] sm:$0xff]  ;;  %s1073_s28 = sshll.u32 %s544_s29, 4  ;;  %s1075_s30 = sshll.u32 %s1071_s22, 4  ;;  %s1074_s28 = int_to_ptr.vmem [resolvable:$true] %s1073_s28  ;;  %s1076_s30 = int_to_ptr.hbm [resolvable:$true] %s1075_s30 }
  0x74   : > { %v546_v10 = vld [vmem:[#allocation8] sm:$0xff]  ;;  %604 = vmatpush.msra.mxu1 %v580_v4  ;;  %635 = vmatpush.msra.mxu2 %v613_v7  ;;  %v1374_v15 = vld [vmem:[%s2060_s8] ss:$0 sm:$0xff]  ;;  %v826_v57 = vld [vmem:[#allocation13 + $0x8] sm:$0xff]  ;;  %s1618_s21 = sshra.s32 %s1076_s30, 4  ;;  %s1624_s17 = scalar_lea.hbm %s2063_s11, 16  ;;  %s1619_s21 = int_to_ptr.hbm [resolvable:$true] %s1618_s21 }
  0x75   : > { %572 = vmatpush.msra.mxu0 %v547_v5  ;;  %v611_v13 = vld [vmem:[#allocation11] sm:$0xff]  ;;  %v1375_v16 = vld [vmem:[%s2059_s7] ss:$0 sm:$0xff]  ;;  %s1620_s24 = scalar_lea.hbm %s1619_s21, 8  ;;  %p1625_p8 = scmp.lt.s32.totalorder %s1619_s21, %s2063_s11 }
  0x76   : > { %605 = vmatpush.msra.mxu1 %v579_v8  ;;  %636 = vmatpush.msra.mxu2 %v612_v12  ;;  %v1376_v21 = vld [vmem:[%s2061_s9] ss:$0 sm:$0xff]  ;;  %v721_v38 = vld [vmem:[#allocation13] sm:$0xff]  ;;  %p1621_p12 = scmp.ne.s32.totalorder %s1619_s21, %s1620_s24  ;;  %p1626_p10 = scmp.lt.s32.totalorder %s1624_s17, %s1620_s24 }
  0x77   : > { %573 = vmatpush.msra.mxu0 %v546_v10  ;;  %1250 = vmatmul.msk.f32.vlgmr.msra.gmra.mxu1 %vm554_vm0, %v578_v9 }
  0x78   : > { %1249 = vmatmul.msk.f32.vlgmr.msra.gmra.mxu0 %vm554_vm0, %v545_v11  ;;  %637 = vmatpush.msra.mxu2 %v611_v13  ;;  %p1622_p2 = pnand %p1621_p12, %p1832_p4  ;;  %p1627_p6 = por %p1626_p10, %p1625_p8 }
  0x79   : > { %1251 = vmatmul.msk.f32.vlgmr.msra.gmra.mxu2 %vm554_vm0, %v610_v14  ;;  %740 = vmatpush.msrb.mxu0 %v721_v38 }
  0x7a   : > { %p1623_p1 = pneg %p1622_p2 }
  0x7c   : > { %p1628_p11 = pnand %p1627_p6, %p1623_p1 }
  0xf4   : > { %v607_v17 = vpop.f32.mrf.mxu1 }
  0xf5   : > { %v575_v18 = vpop.f32.mrf.mxu0  ;;  %v1966_v19 = vadd.f32 %v1374_v15, %v607_v17  ;;  %v1377_v15 = vld [vmem:[%s2062_s10] ss:$0 sm:$0xff] }
  0xf6   : > { %v576_v20 = vadd.f32 %v1375_v16, %v575_v18 }
  0xf7   : > { %748 = vrot.lane.b32.xlu0 %v1966_v19, %s1690_s20  ;;  %1252 = vmatpush.xpose.msk.msra.mxu3 %vm646_vm1, %v1966_v19 }
  0xfa   : > { %1253 = vmatmul.msk.f32.vlgmr.msra.gmra.mxu3 %vm646_vm1, %v576_v20 }
  0xfc   : > { %v639_v22 = vpop.f32.mrf.mxu2 }
  0xfd   : > { %v1975_v23 = vadd.f32 %v1376_v21, %v639_v22 }
  0xff   : > { %746 = vrot.lane.b32.xlu0 %v576_v20, %s1690_s20  ;;  %716 = vmatpush.msrb.mxu3 %v1975_v23 }
 0x101   : > { %845 = vmatpush.msra.mxu3 %v826_v57 }
 0x107   : > { %800 = vrot.lane.b32.xlu0 %v1975_v23, %s1690_s20 }
 0x10f   : > { %851 = vrot.lane.b32.xlu0 %v576_v20, %s1691_s5 }
 0x117   : > { %955 = vrot.lane.b32.xlu0 %v576_v20, %s1692_s12 }
 0x169   : > { %v749_v24 = vpop.permute.xlu0 %748 }
 0x16a   : > { %1256 = vmatpush.xpose.msk.msrb.mxu1 %vm646_vm1, %v749_v24 }
 0x171   : > { %v747_v25 = vpop.permute.xlu0 %746 }
 0x172   : > { %1257 = vmatmul.msk.f32.vlgmr.msrb.gmra.mxu1 %vm646_vm1, %v747_v25 }
 0x179   : > { %v801_v26 = vpop.permute.xlu0 %800 }
 0x17a   : > { %821 = vmatpush.msrb.mxu2 %v801_v26 }
 0x17d   : > { %v670_v27 = vpop.f32.mrf.mxu3 }
 0x17e   : > { %v673_v28 = vmul.f32 0.17677669, %v670_v27 }
 0x180   : > { %v674_v29 = vsel %vm646_vm1, %v673_v28, -inf }
 0x181   : > { %675 = vmax.xlane.f32.xlu1 %v674_v29  ;;  %v852_v8 = vpop.permute.xlu0 %851 }
 0x189   : > { %v956_v10 = vpop.permute.xlu0 %955 }
 0x1ef   : > { %v771_v30 = vpop.f32.mrf.mxu1 }
 0x1f0   : > { %v774_v31 = vmul.f32 0.17677669, %v771_v30 }
 0x1f2   : > { %v775_v32 = vsel %vm646_vm1, %v774_v31, -inf }
 0x1f3   : > { %776 = vmax.xlane.f32.xlu1 %v775_v32 }
 0x1f4   : > { %v676_v33 = vpop.xlane.xlu1 %675 }
 0x1f5   : > { %v677_v34 = vsub.f32 %v673_v28, %v676_v33 }
 0x1f7   : > { %v678_v35 = vmul.f32 1.442695, %v677_v34 }
 0x1f9   : > { %1378 = vpow2.f32 %v678_v35 }
 0x1ff   : > { %v1379_v36 = vpop.eup %1378 }
 0x200   : > { %v680_v37 = vsel %vm646_vm1, %v1379_v36, 0.0 }
 0x201   : > { %681 = vadd.xlane.f32.xlu2 %v680_v37 }
 0x20c   : > { %853 = vrot.lane.b32.xlu1 %v1966_v19, %s1691_s5 }
 0x266   : > { %v777_v39 = vpop.xlane.xlu1 %776 }
 0x267   : > { %v778_v40 = vsub.f32 %v774_v31, %v777_v39 }
 0x269   : > { %v779_v41 = vmul.f32 1.442695, %v778_v40 }
 0x26b   : > { %1380 = vpow2.f32 %v779_v41 }
 0x271   : > { %v1381_v42 = vpop.eup %1380 }
 0x272   : > { %v781_v43 = vsel %vm646_vm1, %v1381_v42, 0.0 }
 0x273   : > { %782 = vadd.xlane.f32.xlu2 %v781_v43 }
 0x274   : > { %v682_v44 = vpop.xlane.xlu2 %681 }
 0x275   : > { %1382 = vrcp.f32 %v682_v44  ;;  %v694_v49 = vand.u32 2147483648, %v682_v44  ;;  %v692_v51 = vand.u32 2147483647, %v682_v44  ;;  %vm688_vm3 = vweird.f32 %v682_v44 }
 0x277   : > { %v695_v53 = vor.u32 1.1754944e-38, %v694_v49  ;;  %vm693_vm5 = vcmp.eq.f32.partialorder %v692_v51, 8.507059e+37 }
 0x27b   : > { %v1383_v45 = vpop.eup %1382 }
 0x27c   : > { %v684_v46 = vmul.f32 %v1383_v45, %v682_v44  ;;  %vm689_vm2 = vweird.f32 %v1383_v45 }
 0x27d   : > { %vm690_vm4 = vmor %vm688_vm3, %vm689_vm2 }
 0x27e   : > { %v685_v47 = vsub.f32 1.0, %v684_v46  ;;  %v854_v48 = vpop.permute.xlu1 %853  ;;  %v930_v46 = vld [vmem:[#allocation13 + $0x10] sm:$0xff] }
 0x27f   : > { %1260 = vmatpush.xpose.msk.msra.mxu0 %vm646_vm1, %v854_v48  ;;  %949 = vmatpush.msra.mxu2 %v930_v46 }
 0x280   : > { %v686_v50 = vmul.f32 %v1383_v45, %v685_v47  ;;  %v1034_v47 = vld [vmem:[#allocation13 + $0x18] sm:$0xff] }
 0x282   : > { %v687_v52 = vadd.f32 %v1383_v45, %v686_v50 }
 0x284   : > { %v691_v54 = vsel %vm690_vm4, %v1383_v45, %v687_v52 }
 0x285   : > { %v696_v55 = vsel %vm693_vm5, %v695_v53, %v691_v54 }
 0x286   : > { %v697_v56 = vmul.f32 %v1379_v36, %v696_v55 }
 0x288   : > { %1254 = vmatmul.msk.f32.vlgmr.msrb.gmra.mxu3 %vm646_vm1, %v697_v56 }
 0x28b   : > { %957 = vrot.lane.b32.xlu2 %v1966_v19, %s1692_s12 }
 0x2e6   : > { %v783_v58 = vpop.xlane.xlu2 %782 }
 0x2e7   : > { %1384 = vrcp.f32 %v783_v58  ;;  %v795_v63 = vand.u32 2147483648, %v783_v58  ;;  %v793_v1 = vand.u32 2147483647, %v783_v58  ;;  %vm789_vm7 = vweird.f32 %v783_v58 }
 0x2e9   : > { %v796_v3 = vor.u32 1.1754944e-38, %v795_v63  ;;  %vm794_vm9 = vcmp.eq.f32.partialorder %v793_v1, 8.507059e+37 }
 0x2ed   : > { %v1385_v59 = vpop.eup %1384 }
 0x2ee   : > { %v785_v60 = vmul.f32 %v1385_v59, %v783_v58  ;;  %v958_v61 = vpop.permute.xlu2 %957  ;;  %vm790_vm6 = vweird.f32 %v1385_v59 }
 0x2ef   : > { %1264 = vmatpush.xpose.msk.msrb.mxu3 %vm646_vm1, %v958_v61  ;;  %vm791_vm8 = vmor %vm789_vm7, %vm790_vm6 }
 0x2f0   : > { %v786_v62 = vsub.f32 1.0, %v785_v60 }
 0x2f2   : > { %v787_v0 = vmul.f32 %v1385_v59, %v786_v62 }
 0x2f4   : > { %v788_v2 = vadd.f32 %v1385_v59, %v787_v0 }
 0x2f6   : > { %v792_v4 = vsel %vm791_vm8, %v1385_v59, %v788_v2 }
 0x2f7   : > { %v797_v5 = vsel %vm794_vm9, %v796_v3, %v792_v4 }
 0x2f8   : > { %v798_v6 = vmul.f32 %v1381_v42, %v797_v5 }
 0x2fa   : > { %1258 = vmatmul.msk.f32.vlgmr.msrb.gmra.mxu2 %vm646_vm1, %v798_v6 }
 0x30b   : > { %v718_v7 = vpop.f32.mrf.mxu3 }
 0x30c   : > { %1255 = vmatmul.msk.f32.vlgmr.msrb.gmra.mxu0 %vm646_vm1, %v718_v7 }
 0x314   : > { %1261 = vmatmul.msk.f32.vlgmr.msra.gmra.mxu0 %vm646_vm1, %v852_v8 }
 0x37d   : > { %v823_v9 = vpop.f32.mrf.mxu2 }
 0x37e   : > { %1259 = vmatmul.msk.f32.vlgmr.msra.gmra.mxu3 %vm646_vm1, %v823_v9 }
 0x386   : > { %1265 = vmatmul.msk.f32.vlgmr.msrb.gmra.mxu3 %vm646_vm1, %v956_v10 }
 0x389   : > { %v742_v11 = vpop.f32.mrf.mxu0 }
 0x38a   : > { %v745_v16 = vadd.f32 %v1377_v15, %v742_v11 }
 0x391   : > { %v876_v12 = vpop.f32.mrf.mxu0 }
 0x392   : > { %v879_v13 = vmul.f32 0.17677669, %v876_v12 }
 0x394   : > { %v880_v14 = vsel %vm646_vm1, %v879_v13, -inf }
 0x395   : > { %881 = vmax.xlane.f32.xlu0 %v880_v14 }
 0x3a9   : > { %904 = vrot.lane.b32.xlu0 %v1975_v23, %s1691_s5 }
 0x401   : > { %v847_v17 = vpop.f32.mrf.mxu3 }
 0x402   : > { %v2005_v18 = vadd.f32 %v847_v17, %v745_v16 }
 0x408   : > { %v882_v19 = vpop.xlane.xlu0 %881 }
 0x409   : > { %v883_v20 = vsub.f32 %v879_v13, %v882_v19  ;;  %v980_v21 = vpop.f32.mrf.mxu3 }
 0x40a   : > { %v983_v22 = vmul.f32 0.17677669, %v980_v21 }
 0x40b   : > { %v884_v24 = vmul.f32 1.442695, %v883_v20 }
 0x40c   : > { %v984_v25 = vsel %vm646_vm1, %v983_v22, -inf }
 0x40d   : > { %1386 = vpow2.f32 %v884_v24  ;;  %985 = vmax.xlane.f32.xlu2 %v984_v25 }
 0x413   : > { %v1387_v26 = vpop.eup %1386 }
 0x414   : > { %v886_v27 = vsel %vm646_vm1, %v1387_v26, 0.0 }
 0x415   : > { %887 = vadd.xlane.f32.xlu1 %v886_v27 }
 0x41b   : > { %v905_v28 = vpop.permute.xlu0 %904 }
 0x41c   : > { %925 = vmatpush.msra.mxu1 %v905_v28 }
 0x41e   : > { %1053 = vmatpush.msrb.mxu1 %v1034_v47 }
 0x42e   : > { %1008 = vrot.lane.b32.xlu1 %v1975_v23, %s1692_s12 }
 0x480   : > { %v986_v29 = vpop.xlane.xlu2 %985 }
 0x481   : > { %v987_v30 = vsub.f32 %v983_v22, %v986_v29 }
 0x483   : > { %v988_v31 = vmul.f32 1.442695, %v987_v30 }
 0x485   : > { %1388 = vpow2.f32 %v988_v31 }
 0x488   : > { %v888_v32 = vpop.xlane.xlu1 %887 }
 0x489   : > { %1390 = vrcp.f32 %v888_v32  ;;  %v900_v38 = vand.u32 2147483648, %v888_v32  ;;  %v898_v40 = vand.u32 2147483647, %v888_v32  ;;  %vm894_vm11 = vweird.f32 %v888_v32 }
 0x48b   : > { %v1389_v33 = vpop.eup %1388  ;;  %v901_v23 = vor.u32 1.1754944e-38, %v900_v38  ;;  %vm899_vm13 = vcmp.eq.f32.partialorder %v898_v40, 8.507059e+37 }
 0x48c   : > { %v990_v34 = vsel %vm646_vm1, %v1389_v33, 0.0 }
 0x48d   : > { %991 = vadd.xlane.f32.xlu2 %v990_v34 }
 0x48f   : > { %v1391_v35 = vpop.eup %1390 }
 0x490   : > { %v890_v36 = vmul.f32 %v1391_v35, %v888_v32  ;;  %vm895_vm10 = vweird.f32 %v1391_v35 }
 0x491   : > { %vm896_vm12 = vmor %vm894_vm11, %vm895_vm10 }
 0x492   : > { %v891_v37 = vsub.f32 1.0, %v890_v36 }
 0x494   : > { %v892_v39 = vmul.f32 %v1391_v35, %v891_v37 }
 0x496   : > { %v893_v41 = vadd.f32 %v1391_v35, %v892_v39 }
 0x498   : > { %v897_v42 = vsel %vm896_vm12, %v1391_v35, %v893_v41 }
 0x499   : > { %v902_v43 = vsel %vm899_vm13, %v901_v23, %v897_v42 }
 0x49a   : > { %v903_v44 = vmul.f32 %v1387_v26, %v902_v43 }
 0x49c   : > { %1262 = vmatmul.msk.f32.vlgmr.msra.gmra.mxu1 %vm646_vm1, %v903_v44 }
 0x4a0   : > { %v1009_v45 = vpop.permute.xlu1 %1008 }
 0x4a1   : > { %1029 = vmatpush.msrb.mxu0 %v1009_v45 }
 0x500   : > { %v992_v48 = vpop.xlane.xlu2 %991 }
 0x501   : > { %1392 = vrcp.f32 %v992_v48  ;;  %v1004_v52 = vand.u32 2147483648, %v992_v48  ;;  %v1002_v54 = vand.u32 2147483647, %v992_v48  ;;  %vm998_vm15 = vweird.f32 %v992_v48 }
 0x503   : > { %v1005_v56 = vor.u32 1.1754944e-38, %v1004_v52  ;;  %vm1003_vm3 = vcmp.eq.f32.partialorder %v1002_v54, 8.507059e+37 }
 0x507   : > { %v1393_v49 = vpop.eup %1392 }
 0x508   : > { %v994_v50 = vmul.f32 %v1393_v49, %v992_v48  ;;  %vm999_vm14 = vweird.f32 %v1393_v49 }
 0x509   : > { %vm1000_vm2 = vmor %vm998_vm15, %vm999_vm14 }
 0x50a   : > { %v995_v51 = vsub.f32 1.0, %v994_v50 }
 0x50c   : > { %v996_v53 = vmul.f32 %v1393_v49, %v995_v51 }
 0x50e   : > { %v997_v55 = vadd.f32 %v1393_v49, %v996_v53 }
 0x510   : > { %v1001_v57 = vsel %vm1000_vm2, %v1393_v49, %v997_v55 }
 0x511   : > { %v1006_v58 = vsel %vm1003_vm3, %v1005_v56, %v1001_v57 }
 0x512   : > { %v1007_v59 = vmul.f32 %v1389_v33, %v1006_v58 }
 0x514   : > { %1266 = vmatmul.msk.f32.vlgmr.msrb.gmra.mxu0 %vm646_vm1, %v1007_v59 }
 0x519   : > { %v927_v60 = vpop.f32.mrf.mxu1 }
 0x51a   : > { %1263 = vmatmul.msk.f32.vlgmr.msra.gmra.mxu2 %vm646_vm1, %v927_v60 }
 0x591   : > { %v1031_v61 = vpop.f32.mrf.mxu0 }
 0x592   : > { %1267 = vmatmul.msk.f32.vlgmr.msrb.gmra.mxu1 %vm646_vm1, %v1031_v61 }
 0x59d   : > { %v951_v62 = vpop.f32.mrf.mxu2 }
 0x59e   : > { %v954_v63 = vadd.f32 %v951_v62, %v2005_v18 }
 0x60f   : > { %v1055_v0 = vpop.f32.mrf.mxu1 }
 0x610   : > { %v1058_v1 = vadd.f32 %v1055_v0, %v954_v63 }
 0x612   : > { %1059 = vst.msk [vmem:[%s544_s29] sm:$0xff] %vm554_vm0, %v1058_v1 }
 0x613   : > { %1631 = shalt.err (!%p1628_p11)
}
 0x614   : > { %1294 = dma.vmem_to_hbm [thread:$0]  (%p1832_p4), %s1074_s28, 128, %s1076_s30, %s1061_s27  }
 0x615 PF: > { %s2107_s14 = sld [smem:[#allocation20_spill]] }
 0x616   : > { %s2109_s5 = sld [smem:[#allocation21_spill]] }
 0x61b   : > { %s1087_s12 = sand.u32 1, %s2107_s14  }
 0x61c   : > { %p2110_p13 = scmp.ge.s32.totalorder %s2109_s5, 2  ;;  %s1088_s16 = scalar_lea.sflag [#allocation4], %s1087_s12 }
 0x61e   : > { %p1320_p3 = pnand %p2110_p13, %p1836_p5 }
 0x620   : > { %p1321_p7 = pneg %p1320_p3 }
 0x622   : > { %1665 = dma.done.wait (%p1321_p7), %s1088_s16, 128  }
 0x623   : > { %1667 = vsyncadd (%p1321_p7), %s1088_s16, 4294967168  ;;  %s2111_s20 = sld [smem:[#allocation22_spill]]  ;;  %s2113_s17 = smov %s1674_s18 }
 0x624   : > { %s2112_s4 = sld [smem:[#allocation23_spill]]  ;;  %s2114_s18 = smov %s1678_s19 }
 0x629   : > { %p29_p9 = scmp.ge.s32.totalorder %s2111_s20, 4  }
 0x62a   : > { %s2115_s19 = smov %s2112_s4 }
 0x62b   :  { %31 = sbr.rel (!%p29_p9) target bundleno = 15 (0xf), region = 149 }
 0x630   :  { %1094 = vsyncpa [#allocation3], 1 }
 0x631   :  { %1096 = vsyncpa [#allocation3 + $0x1], 1 }
 0x632   :  { %1097 = vsyncpa [#allocation6], 1 }
 0x633   :  { %1099 = vsyncpa [#allocation6 + $0x1], 1 }
 0x634   :  { %1100 = vsyncpa [#allocation9], 1 }
 0x635   :  { %1101 = vsyncpa [#allocation12], 1 }
 0x636   :  { %1102 = vsyncpa [#allocation4], 1 }
 0x637   :  { %1104 = vsyncpa [#allocation4 + $0x1], 1 }

</bundles_post_ra>
